<compile_context>
chip_gen: v5e
topology: v5e:2x2
jax: 0.10.0
libtpu: 0.0.40
codegen_flags: <defaults>
</compile_context>

<pallas_src>
import jax
import jax.numpy as jnp
from jax.experimental import pallas as pl
from jax.experimental.pallas import tpu as pltpu


DIM_OBSERVATION = 32             # forced by FC1.in_features == 8 and conv stride 4
DIM_ACTION = 4
HIDDEN = 32
CONV_OUT = DIM_OBSERVATION // 4  # = 8
LANE = 128


def actor_kernel(x_ref, wc_ref, bc_ref, w1_ref, b1_ref, w2_ref, b2_ref,
                 w3_ref, b3_ref, out_ref):
    # x_ref: [32, B_TILE]  (features on sublanes, batch on lanes -> lane dense)
    x = x_ref[...].astype(jnp.float32)

    # Conv1d(1,1,k=4,s=4) as an equivalent dense matmul ([8,32] weights) + ReLU
    h = jnp.dot(wc_ref[...], x, preferred_element_type=jnp.float32)   # [8, BT]
    h = jnp.maximum(h + bc_ref[...], 0.0)

    # FC1 + ReLU
    h = jnp.dot(w1_ref[...], h, preferred_element_type=jnp.float32)   # [32, BT]
    h = jnp.maximum(h + b1_ref[...], 0.0)

    # FC2 + ReLU
    h = jnp.dot(w2_ref[...], h, preferred_element_type=jnp.float32)   # [32, BT]
    h = jnp.maximum(h + b2_ref[...], 0.0)

    # FC3 (no activation)
    o = jnp.dot(w3_ref[...], h, preferred_element_type=jnp.float32)   # [A, BT]
    out_ref[...] = (o + b3_ref[...]).astype(out_ref.dtype)


def actor_forward(obs, params, *, block_b=4096, input_dtype=jnp.float32):
    """obs: [B, DIM_OBSERVATION] float32.  Returns [B, DIM_ACTION] float32."""
    B = obs.shape[0]
    wc, bc, w1, b1, w2, b2, w3, b3 = params

    # Lane-dense layout + optional bf16 streaming of the HBM-bound obs input.
    obs_t = obs.T.astype(input_dtype)                      # [32, B]

    # Batch tile: multiple of 128 lanes, capped at block_b; pad B up to a
    # whole number of tiles (padding columns are zeros, sliced off afterward).
    bt = min(block_b, pl.cdiv(B, LANE) * LANE)
    b_pad = pl.cdiv(B, bt) * bt
    if b_pad != B:
        obs_t = jnp.pad(obs_t, ((0, 0), (0, b_pad - B)))

    grid = (b_pad // bt,)

    def resident(arr):
        # Constant block index -> stays VMEM-resident across all grid steps.
        return pl.BlockSpec(arr.shape, lambda i: (0, 0))

    flops = 2 * b_pad * (DIM_OBSERVATION * CONV_OUT + CONV_OUT * HIDDEN
                         + HIDDEN * HIDDEN + HIDDEN * DIM_ACTION)
    weight_bytes = sum(int(a.size) * a.dtype.itemsize for a in params)
    bytes_accessed = (int(obs_t.size) * obs_t.dtype.itemsize
                      + b_pad * DIM_ACTION * 4 + weight_bytes)

    out_t = pl.pallas_call(
        actor_kernel,
        out_shape=jax.ShapeDtypeStruct((DIM_ACTION, b_pad), jnp.float32),
        grid=grid,
        in_specs=[pl.BlockSpec((DIM_OBSERVATION, bt), lambda i: (0, i)),
                  resident(wc), resident(bc),
                  resident(w1), resident(b1),
                  resident(w2), resident(b2),
                  resident(w3), resident(b3)],
        out_specs=pl.BlockSpec((DIM_ACTION, bt), lambda i: (0, i)),
        compiler_params=pltpu.CompilerParams(
            dimension_semantics=("parallel",)),
        cost_estimate=pl.CostEstimate(flops=flops, transcendentals=0,
                                      bytes_accessed=bytes_accessed),
    )(obs_t, wc, bc, w1, b1, w2, b2, w3, b3)

    return out_t[:, :B].T                                   # [B, DIM_ACTION]


def init_params(key):
    """Deterministic init matching the PyTorch module's parameter shapes.

    Linear/conv weights are kept in PyTorch's native [out, in] layout (which is
    exactly what the transposed, lane-dense kernel wants); biases are [out, 1].
    """
    ks = jax.random.split(key, 8)

    def unif(k, shape, fan_in):
        bound = 1.0 / jnp.sqrt(jnp.float32(fan_in))
        return jax.random.uniform(k, shape, jnp.float32, -bound, bound)

    # Conv1d(1, 1, kernel_size=4): weight [1,1,4], bias [1]  (fan_in = 1*4)
    w_conv = unif(ks[0], (4,), 4)
    b_conv = unif(ks[1], (1,), 4)

    # Equivalent dense conv matrix, [out, in] = [8, 32]: wc[j, 4*j + k] = w_conv[k]
    cols = jnp.arange(DIM_OBSERVATION)
    wc = jnp.zeros((CONV_OUT, DIM_OBSERVATION), jnp.float32)
    wc = wc.at[cols // 4, cols].set(w_conv[cols % 4])
    bc = jnp.broadcast_to(b_conv, (CONV_OUT,)).reshape(CONV_OUT, 1)
    bc = bc.astype(jnp.float32)

    w1 = unif(ks[2], (HIDDEN, CONV_OUT), CONV_OUT)        # [32, 8]
    b1 = unif(ks[3], (HIDDEN, 1), CONV_OUT)
    w2 = unif(ks[4], (HIDDEN, HIDDEN), HIDDEN)            # [32, 32]
    b2 = unif(ks[5], (HIDDEN, 1), HIDDEN)
    w3 = unif(ks[6], (DIM_ACTION, HIDDEN), HIDDEN)        # [A, 32]
    b3 = unif(ks[7], (DIM_ACTION, 1), HIDDEN)

    return (wc, bc, w1, b1, w2, b2, w3, b3)


def actor_reference(obs, params):
    """Pure-JAX reference mirroring the PyTorch forward exactly."""
    wc, bc, w1, b1, w2, b2, w3, b3 = params
    h = jax.nn.relu(obs @ wc.T + bc[:, 0])   # conv1d(1,1,4,stride=4) + relu
    h = jax.nn.relu(h @ w1.T + b1[:, 0])
    h = jax.nn.relu(h @ w2.T + b2[:, 0])
    return h @ w3.T + b3[:, 0]


if __name__ == "__main__":
    key = jax.random.PRNGKey(0)
    k_obs, k_par = jax.random.split(key)
    params = init_params(k_par)

    # --- small-batch f32 path (exact match against the reference) ---
    B = 2
    obs = jax.random.normal(k_obs, (B, DIM_OBSERVATION), jnp.float32)
    out = actor_forward(obs, params)
    jax.block_until_ready(out)
    ref = actor_reference(obs, params)
    assert out.shape == (B, DIM_ACTION)
    assert jnp.allclose(out, ref, atol=1e-5, rtol=1e-5)

    # --- multi-tile grid + padded tail + bf16-streamed obs path ---
    B2 = 300  # not a multiple of 128 -> exercises padding; block_b=128 -> grid of 3
    obs2 = jax.random.normal(jax.random.PRNGKey(1), (B2, DIM_OBSERVATION),
                             jnp.float32)
    out2 = actor_forward(obs2, params, block_b=128, input_dtype=jnp.bfloat16)
    jax.block_until_ready(out2)
    # Kernel only quantizes the obs stream to bf16 (math stays f32), so the
    # reference on bf16-rounded obs matches tightly.
    ref2 = actor_reference(obs2.astype(jnp.bfloat16).astype(jnp.float32), params)
    assert out2.shape == (B2, DIM_ACTION)
    assert jnp.allclose(out2, ref2, atol=1e-4, rtol=1e-4)

    print("KERNEL_OK")
</pallas_src>

<mosaic_0001>
module attributes {stable_mosaic.version = 11 : i64} {
  func.func @actor_kernel(%arg0: i32, %arg1: memref<32x128xf32, #tpu.memory_space<vmem>>, %arg2: memref<8x32xf32, #tpu.memory_space<vmem>>, %arg3: memref<8x1xf32, #tpu.memory_space<vmem>>, %arg4: memref<32x8xf32, #tpu.memory_space<vmem>>, %arg5: memref<32x1xf32, #tpu.memory_space<vmem>>, %arg6: memref<32x32xf32, #tpu.memory_space<vmem>>, %arg7: memref<32x1xf32, #tpu.memory_space<vmem>>, %arg8: memref<4x32xf32, #tpu.memory_space<vmem>>, %arg9: memref<4x1xf32, #tpu.memory_space<vmem>>, %arg10: memref<4x128xf32, #tpu.memory_space<vmem>>) attributes {dimension_semantics = [#tpu.dimension_semantics<parallel>], iteration_bounds = array<i64: 1>, scalar_prefetch = 0 : i64, scratch_operands = 0 : i64, tpu.core_type = #tpu.core_type<tc>, window_params = [{transform_indices = @transform_0, window_bounds = array<i64: 32, 128>}, {pipeline_mode = #tpu.pipeline_mode<synchronous>, transform_indices = @transform_1, window_bounds = array<i64: 8, 32>}, {pipeline_mode = #tpu.pipeline_mode<synchronous>, transform_indices = @transform_2, window_bounds = array<i64: 8, 1>}, {pipeline_mode = #tpu.pipeline_mode<synchronous>, transform_indices = @transform_3, window_bounds = array<i64: 32, 8>}, {pipeline_mode = #tpu.pipeline_mode<synchronous>, transform_indices = @transform_4, window_bounds = array<i64: 32, 1>}, {pipeline_mode = #tpu.pipeline_mode<synchronous>, transform_indices = @transform_5, window_bounds = array<i64: 32, 32>}, {pipeline_mode = #tpu.pipeline_mode<synchronous>, transform_indices = @transform_6, window_bounds = array<i64: 32, 1>}, {pipeline_mode = #tpu.pipeline_mode<synchronous>, transform_indices = @transform_7, window_bounds = array<i64: 4, 32>}, {pipeline_mode = #tpu.pipeline_mode<synchronous>, transform_indices = @transform_8, window_bounds = array<i64: 4, 1>}, {transform_indices = @transform_9, window_bounds = array<i64: 4, 128>}]} {
    %c0 = arith.constant 0 : index
    %c0_0 = arith.constant 0 : index
    %0 = vector.load %arg1[%c0, %c0_0] : memref<32x128xf32, #tpu.memory_space<vmem>>, vector<32x128xf32>
    %c0_1 = arith.constant 0 : index
    %c0_2 = arith.constant 0 : index
    %1 = vector.load %arg2[%c0_1, %c0_2] : memref<8x32xf32, #tpu.memory_space<vmem>>, vector<8x32xf32>
    %cst = arith.constant dense<0.000000e+00> : vector<8x128xf32>
    %2 = tpu.matmul %1, %0, %cst {dimension_numbers = #tpu.dot_dimension_numbers<[1], [0], [0], [1], [0, 0, 1, 1], [], []>} : vector<8x32xf32>, vector<32x128xf32>, vector<8x128xf32> -> vector<8x128xf32>
    %c0_3 = arith.constant 0 : index
    %c0_4 = arith.constant 0 : index
    %3 = vector.load %arg3[%c0_3, %c0_4] : memref<8x1xf32, #tpu.memory_space<vmem>>, vector<8x1xf32>
    %4 = vector.broadcast %3 : vector<8x1xf32> to vector<8x128xf32>
    %5 = arith.addf %2, %4 : vector<8x128xf32>
    %cst_5 = arith.constant 0.000000e+00 : f32
    %6 = vector.broadcast %cst_5 : f32 to vector<8x128xf32>
    %7 = arith.maximumf %5, %6 : vector<8x128xf32>
    %c0_6 = arith.constant 0 : index
    %c0_7 = arith.constant 0 : index
    %8 = vector.load %arg4[%c0_6, %c0_7] : memref<32x8xf32, #tpu.memory_space<vmem>>, vector<32x8xf32>
    %cst_8 = arith.constant dense<0.000000e+00> : vector<32x128xf32>
    %9 = tpu.matmul %8, %7, %cst_8 {dimension_numbers = #tpu.dot_dimension_numbers<[1], [0], [0], [1], [0, 0, 1, 1], [], []>} : vector<32x8xf32>, vector<8x128xf32>, vector<32x128xf32> -> vector<32x128xf32>
    %c0_9 = arith.constant 0 : index
    %c0_10 = arith.constant 0 : index
    %10 = vector.load %arg5[%c0_9, %c0_10] : memref<32x1xf32, #tpu.memory_space<vmem>>, vector<32x1xf32>
    %11 = vector.broadcast %10 : vector<32x1xf32> to vector<32x128xf32>
    %12 = arith.addf %9, %11 : vector<32x128xf32>
    %cst_11 = arith.constant 0.000000e+00 : f32
    %13 = vector.broadcast %cst_11 : f32 to vector<32x128xf32>
    %14 = arith.maximumf %12, %13 : vector<32x128xf32>
    %c0_12 = arith.constant 0 : index
    %c0_13 = arith.constant 0 : index
    %15 = vector.load %arg6[%c0_12, %c0_13] : memref<32x32xf32, #tpu.memory_space<vmem>>, vector<32x32xf32>
    %cst_14 = arith.constant dense<0.000000e+00> : vector<32x128xf32>
    %16 = tpu.matmul %15, %14, %cst_14 {dimension_numbers = #tpu.dot_dimension_numbers<[1], [0], [0], [1], [0, 0, 1, 1], [], []>} : vector<32x32xf32>, vector<32x128xf32>, vector<32x128xf32> -> vector<32x128xf32>
    %c0_15 = arith.constant 0 : index
    %c0_16 = arith.constant 0 : index
    %17 = vector.load %arg7[%c0_15, %c0_16] : memref<32x1xf32, #tpu.memory_space<vmem>>, vector<32x1xf32>
    %18 = vector.broadcast %17 : vector<32x1xf32> to vector<32x128xf32>
    %19 = arith.addf %16, %18 : vector<32x128xf32>
    %cst_17 = arith.constant 0.000000e+00 : f32
    %20 = vector.broadcast %cst_17 : f32 to vector<32x128xf32>
    %21 = arith.maximumf %19, %20 : vector<32x128xf32>
    %c0_18 = arith.constant 0 : index
    %c0_19 = arith.constant 0 : index
    %22 = vector.load %arg8[%c0_18, %c0_19] : memref<4x32xf32, #tpu.memory_space<vmem>>, vector<4x32xf32>
    %cst_20 = arith.constant dense<0.000000e+00> : vector<4x128xf32>
    %23 = tpu.matmul %22, %21, %cst_20 {dimension_numbers = #tpu.dot_dimension_numbers<[1], [0], [0], [1], [0, 0, 1, 1], [], []>} : vector<4x32xf32>, vector<32x128xf32>, vector<4x128xf32> -> vector<4x128xf32>
    %c0_21 = arith.constant 0 : index
    %c0_22 = arith.constant 0 : index
    %24 = vector.load %arg9[%c0_21, %c0_22] : memref<4x1xf32, #tpu.memory_space<vmem>>, vector<4x1xf32>
    %25 = vector.broadcast %24 : vector<4x1xf32> to vector<4x128xf32>
    %26 = arith.addf %23, %25 : vector<4x128xf32>
    %c0_23 = arith.constant 0 : index
    %c0_24 = arith.constant 0 : index
    %27 = vector.load %arg10[%c0_23, %c0_24] : memref<4x128xf32, #tpu.memory_space<vmem>>, vector<4x128xf32>
    tpu.vector_store %arg10[%c0_23, %c0_24], %26 {strides = array<i32>} : memref<4x128xf32, #tpu.memory_space<vmem>>, vector<4x128xf32>,
    return
  }
  func.func @transform_0(%arg0: i32) -> (i32, i32) {
    %c0_i32 = arith.constant 0 : i32
    %c0_i32_0 = arith.constant 0 : i32
    return %c0_i32, %arg0 : i32, i32
  }
  func.func @transform_1(%arg0: i32) -> (i32, i32) {
    %c0_i32 = arith.constant 0 : i32
    %c0_i32_0 = arith.constant 0 : i32
    %c0_i32_1 = arith.constant 0 : i32
    return %c0_i32, %c0_i32_0 : i32, i32
  }
  func.func @transform_2(%arg0: i32) -> (i32, i32) {
    %c0_i32 = arith.constant 0 : i32
    %c0_i32_0 = arith.constant 0 : i32
    %c0_i32_1 = arith.constant 0 : i32
    return %c0_i32, %c0_i32_0 : i32, i32
  }
  func.func @transform_3(%arg0: i32) -> (i32, i32) {
    %c0_i32 = arith.constant 0 : i32
    %c0_i32_0 = arith.constant 0 : i32
    %c0_i32_1 = arith.constant 0 : i32
    return %c0_i32, %c0_i32_0 : i32, i32
  }
  func.func @transform_4(%arg0: i32) -> (i32, i32) {
    %c0_i32 = arith.constant 0 : i32
    %c0_i32_0 = arith.constant 0 : i32
    %c0_i32_1 = arith.constant 0 : i32
    return %c0_i32, %c0_i32_0 : i32, i32
  }
  func.func @transform_5(%arg0: i32) -> (i32, i32) {
    %c0_i32 = arith.constant 0 : i32
    %c0_i32_0 = arith.constant 0 : i32
    %c0_i32_1 = arith.constant 0 : i32
    return %c0_i32, %c0_i32_0 : i32, i32
  }
  func.func @transform_6(%arg0: i32) -> (i32, i32) {
    %c0_i32 = arith.constant 0 : i32
    %c0_i32_0 = arith.constant 0 : i32
    %c0_i32_1 = arith.constant 0 : i32
    return %c0_i32, %c0_i32_0 : i32, i32
  }
  func.func @transform_7(%arg0: i32) -> (i32, i32) {
    %c0_i32 = arith.constant 0 : i32
    %c0_i32_0 = arith.constant 0 : i32
    %c0_i32_1 = arith.constant 0 : i32
    return %c0_i32, %c0_i32_0 : i32, i32
  }
  func.func @transform_8(%arg0: i32) -> (i32, i32) {
    %c0_i32 = arith.constant 0 : i32
    %c0_i32_0 = arith.constant 0 : i32
    %c0_i32_1 = arith.constant 0 : i32
    return %c0_i32, %c0_i32_0 : i32, i32
  }
  func.func @transform_9(%arg0: i32) -> (i32, i32) {
    %c0_i32 = arith.constant 0 : i32
    %c0_i32_0 = arith.constant 0 : i32
    return %c0_i32, %arg0 : i32, i32
  }
}

</mosaic_0001>

<bundles_post_ra>
// kernel: tpu_custom_call.1
= control target key start
LH: loop header
LB: loop body
LE: loop exit
PB: predicated region body
PF: predicated region fallthrough
CT: control target
= control target key end

     0   :  { %v309_v3 = vmov 0   ;;  %s442_s0 = inlined_call_operand.vmem [shape: f32[32,128], index: 0, kind: input, shape index: {}]   ;;  %s443_s1 = inlined_call_operand.vmem [shape: f32[8,32], index: 1, kind: input, shape index: {}]   ;;  %s444_s2 = inlined_call_operand.vmem [shape: f32[8,1], index: 2, kind: input, shape index: {}]   ;;  %s445_s3 = inlined_call_operand.vmem [shape: f32[32,8], index: 3, kind: input, shape index: {}]   ;;  %s446_s4 = inlined_call_operand.vmem [shape: f32[32,1], index: 4, kind: input, shape index: {}]   ;;  %s447_s5 = inlined_call_operand.vmem [shape: f32[32,32], index: 5, kind: input, shape index: {}]   ;;  %s448_s6 = inlined_call_operand.vmem [shape: f32[32,1], index: 6, kind: input, shape index: {}]   ;;  %s449_s7 = inlined_call_operand.vmem [shape: f32[4,32], index: 7, kind: input, shape index: {}]   ;;  %s450_s8 = inlined_call_operand.vmem [shape: f32[4,1], index: 8, kind: input, shape index: {}]   ;;  %s451_s9 = inlined_call_operand.hbm [shape: f32[4,128], index: 9, kind: output, shape index: {}]  }
   0x1   :  { %v36_v0 = vld [vmem:[%s442_s0 + $0x18] sm:$0xff]  ;;  %v38_v1 = vld [vmem:[%s444_s2] sm:$0xff]  ;;  %v35_v2 = vld [vmem:[%s442_s0 + $0x10] sm:$0xff]  ;;  %280 = vset.pattern.permute.xlu0 %v309_v3  ;;  %281 = vset.pattern.permute.xlu1 %v309_v3 }
   0x2   :  { %60 = vmatpush.msra.mxu0 %v36_v0  ;;  %41 = vperm.xlu0 %280, %v38_v1   ;;  %v34_v4 = vld [vmem:[%s442_s0 + $0x8] sm:$0xff] }
   0x3   :  { %282 = vset.pattern.permute.xlu2 %v309_v3 }
   0x4   :  { %61 = vmatpush.msra.mxu0 %v35_v2 }
   0x5   :  { %14 = vsyncpa [#allocation3], 0  ;;  %v33_v5 = vld [vmem:[%s442_s0] sm:$0xff]  ;;  %vm44_vm0 = vcmask 261120   ;;  %v76_v7 = vld [vmem:[%s446_s4 + $0x18] sm:$0xff]  ;;  %vm97_vm1 = vcmask 64512  }
   0x6   :  { %62 = vmatpush.msra.mxu0 %v34_v4  ;;  %v37_v6 = vld [vmem:[%s443_s1] sm:$0xff]  ;;  %v149_v8 = vld [vmem:[%s448_s6 + $0x10] sm:$0xff]  ;;  %v74_v11 = vld [vmem:[%s446_s4 + $0x8] sm:$0xff]  ;;  %s310_s25 = smov [#allocation2]   ;;  %s254_s29 = sshll.u32 %s451_s9, 4  ;;  %s255_s29 = int_to_ptr.hbm [resolvable:$true] %s254_s29 }
   0x7   :  { %v217_v9 = vld [vmem:[%s450_s8] sm:$0xf]  ;;  %v75_v10 = vld [vmem:[%s446_s4 + $0x10] sm:$0xff]  ;;  %v148_v12 = vld [vmem:[%s448_s6 + $0x8] sm:$0xff]  ;;  %s252_s26 = sshll.u32 %s310_s25, 4  ;;  %s253_s26 = int_to_ptr.vmem [resolvable:$true] %s252_s26 }
   0x8   :  { %63 = vmatpush.msra.mxu0 %v33_v5  ;;  %89 = vperm.xlu1 %281, %v75_v10   ;;  %v73_v13 = vld [vmem:[%s446_s4] sm:$0xff]  ;;  %v150_v14 = vld [vmem:[%s448_s6 + $0x18] sm:$0xff]  ;;  %v70_v22 = vld [vmem:[%s445_s3 + $0x8] sm:$0xff] }
   0x9   :  { %263 = vmatmul.msk.f32.vlgmr.msra.gmra.mxu0 %vm44_vm0, %v37_v6  ;;  %79 = vperm.xlu2 %282, %v73_v13   ;;  %v69_v19 = vld [vmem:[%s445_s3] sm:$0xff]  ;;  %v72_v20 = vld [vmem:[%s445_s3 + $0x18] sm:$0xff]  ;;  %v71_v23 = vld [vmem:[%s445_s3 + $0x10] sm:$0xff] }
   0xa   :  { %94 = vperm.xlu0 %280, %v76_v7   ;;  %v147_v21 = vld [vmem:[%s448_s6] sm:$0xff]  ;;  %v144_v41 = vld [vmem:[%s447_s5 + $0x8] sm:$0xff]  ;;  %v145_v42 = vld [vmem:[%s447_s5 + $0x10] sm:$0xff] }
   0xb   :  { %v143_v40 = vld [vmem:[%s447_s5] sm:$0xff]  ;;  %v146_v43 = vld [vmem:[%s447_s5 + $0x18] sm:$0xff] }
   0xc   :  { %v216_v60 = vld [vmem:[%s449_s7] sm:$0xf] }
  0x10   :  { %84 = vperm.xlu1 %281, %v74_v11  }
  0x11   :  { %168 = vperm.xlu2 %282, %v150_v14  }
  0x12   :  { %163 = vperm.xlu0 %280, %v149_v8  }
  0x18   :  { %158 = vperm.xlu1 %281, %v148_v12  }
  0x19   :  { %153 = vperm.xlu2 %282, %v147_v21  }
  0x1a   :  { %220 = vperm.xlu0 %280, %v217_v9  }
  0x63   :  { %v80_v31 = vpop.permute.xlu2 %79 }
  0x6b   :  { %v169_v46 = vpop.permute.xlu2 %168 }
  0x73   :  { %v154_v55 = vpop.permute.xlu2 %153 }
  0x74   :  { %v42_v15 = vpop.permute.xlu0 %41 }
  0x7a   :  { %v90_v26 = vpop.permute.xlu1 %89 }
  0x7c   :  { %v95_v25 = vpop.permute.xlu0 %94 }
  0x82   :  { %v85_v32 = vpop.permute.xlu1 %84 }
  0x84   :  { %v164_v47 = vpop.permute.xlu0 %163 }
  0x86   :  { %v65_v16 = vpop.f32.mrf.mxu0 }
  0x87   :  { %v66_v17 = vadd.f32 %v65_v16, %v42_v15 }
  0x89   :  { %v68_v18 = vmax.f32 %v66_v17, 0.0 }
  0x8a   :  { %v159_v51 = vpop.permute.xlu1 %158 }
  0x8b   :  { %125 = vmatpush.msra.mxu1 %v68_v18  ;;  %273 = vmatpush.msra.mxu3 %v68_v18 }
  0x8c   :  { %264 = vmatmul.msk.f32.vlgmr.msra.gmra.mxu1 %vm97_vm1, %v69_v19  ;;  %267 = vmatmul.msk.f32.vlgmr.msra.gmra.mxu3 %vm97_vm1, %v72_v20  ;;  %v221_v61 = vpop.permute.xlu0 %220 }
  0x94   :  { %265 = vmatmul.msk.f32.gmra.mxu1 %vm97_vm1, %v70_v22 }
  0x9c   :  { %266 = vmatmul.msk.f32.gmra.mxu1 %vm97_vm1, %v71_v23 }
 0x109   :  { %v127_v24 = vpop.f32.mrf.mxu1 }
 0x10a   :  { %v128_v36 = vadd.f32 %v127_v24, %v80_v31 }
 0x10c   :  { %v139_v39 = vmax.f32 %v128_v36, 0.0 }
 0x10f   :  { %v136_v27 = vpop.f32.mrf.mxu3 }
 0x110   :  { %v137_v28 = vadd.f32 %v136_v27, %v95_v25 }
 0x111   :  { %v130_v29 = vpop.f32.mrf.mxu1 }
 0x112   :  { %v142_v30 = vmax.f32 %v137_v28, 0.0  ;;  %v131_v34 = vadd.f32 %v130_v29, %v85_v32 }
 0x114   :  { %195 = vmatpush.msrb.mxu0 %v142_v30  ;;  %274 = vmatpush.msra.mxu2 %v142_v30  ;;  %v140_v38 = vmax.f32 %v131_v34, 0.0 }
 0x119   :  { %v133_v33 = vpop.f32.mrf.mxu1 }
 0x11a   :  { %v134_v35 = vadd.f32 %v133_v33, %v90_v26 }
 0x11c   :  { %v141_v37 = vmax.f32 %v134_v35, 0.0 }
 0x11e   :  { %196 = vmatpush.msrb.mxu0 %v141_v37  ;;  %275 = vmatpush.msra.mxu2 %v141_v37 }
 0x120   :  { %197 = vmatpush.msrb.mxu0 %v140_v38  ;;  %276 = vmatpush.msra.mxu2 %v140_v38 }
 0x122   :  { %198 = vmatpush.msrb.mxu0 %v139_v39  ;;  %277 = vmatpush.msra.mxu2 %v139_v39 }
 0x123   :  { %268 = vmatmul.msk.f32.vlgmr.msrb.gmra.mxu0 %vm44_vm0, %v143_v40  ;;  %269 = vmatmul.msk.f32.vlgmr.msra.gmra.mxu2 %vm44_vm0, %v144_v41 }
 0x12b   :  { %270 = vmatmul.msk.f32.gmra.mxu2 %vm44_vm0, %v145_v42 }
 0x133   :  { %271 = vmatmul.msk.f32.gmra.mxu2 %vm44_vm0, %v146_v43 }
 0x1a0   :  { %v200_v52 = vpop.f32.mrf.mxu0 }
 0x1a1   :  { %v201_v56 = vadd.f32 %v200_v52, %v154_v55 }
 0x1a3   :  { %v212_v59 = vmax.f32 %v201_v56, 0.0 }
 0x1a6   :  { %v203_v44 = vpop.f32.mrf.mxu2 }
 0x1a7   :  { %v204_v53 = vadd.f32 %v203_v44, %v159_v51 }
 0x1a9   :  { %v213_v58 = vmax.f32 %v204_v53, 0.0 }
 0x1ae   :  { %v206_v45 = vpop.f32.mrf.mxu2 }
 0x1af   :  { %v207_v49 = vadd.f32 %v206_v45, %v164_v47 }
 0x1b1   :  { %v214_v57 = vmax.f32 %v207_v49, 0.0 }
 0x1b6   :  { %v209_v48 = vpop.f32.mrf.mxu2 }
 0x1b7   :  { %v210_v50 = vadd.f32 %v209_v48, %v169_v46 }
 0x1b9   :  { %v215_v54 = vmax.f32 %v210_v50, 0.0 }
 0x1bb   :  { %238 = vmatpush.msrb.mxu3 %v215_v54 }
 0x1bd   :  { %239 = vmatpush.msrb.mxu3 %v214_v57 }
 0x1bf   :  { %240 = vmatpush.msrb.mxu3 %v213_v58 }
 0x1c1   :  { %241 = vmatpush.msrb.mxu3 %v212_v59 }
 0x1c2   :  { %272 = vmatmul.msk.f32.vlgmr.msrb.gmra.mxu3 %vm44_vm0, %v216_v60 }
 0x245   :  { %v243_v62 = vpop.f32.mrf.mxu3 }
 0x246   :  { %v244_v63 = vadd.f32 %v243_v62, %v221_v61 }
 0x248   :  { %246 = vst [vmem:[#allocation2] sm:$0xf] %v244_v63 }
 0x249   :  { %257 = dma.vmem_to_hbm [thread:$0]  %s253_s26, 64, %s255_s29, [#allocation3]  }
 0x24a   :  { %307 = dma.done.wait [#allocation3], 64  }
 0x24b   :  { %308 = vsyncadd [#allocation3], 4294967232 }
 0x24c   :  { %262 = vsyncpa [#allocation3], 1 }

</bundles_post_ra>
